<compile_context>
chip_gen: v7x
topology: tpu7x:2x2x1
jax: 0.10.0
libtpu: 0.0.40
codegen_flags: <defaults>
</compile_context>

<pallas_src>
import jax
import jax.numpy as jnp
from jax.experimental import pallas as pl
from jax.experimental.pallas import tpu as pltpu


def _round_up(n, m):
    return ((n + m - 1) // m) * m


# --------------------------------------------------------------------------
# Kernel body: two MXU matmuls (bf16 in, fp32 accumulate) + two VPU ReLUs.
# --------------------------------------------------------------------------
def _adapter_kernel(x_ref, w1_ref, w2_ref, o_ref):
    # x_ref : (TM, c_in)          current row tile of the input
    # w1_ref: (c_in, hidden_p)    W1.T, padded, VMEM-resident for all steps
    # w2_ref: (hidden_p, c_in_p)  W2.T, padded, VMEM-resident for all steps
    # o_ref : (TM, c_in_p)        lane-dense output tile
    x = x_ref[...].astype(w1_ref.dtype)                        # cast to bf16
    h = jnp.dot(x, w1_ref[...], preferred_element_type=jnp.float32)
    h = jnp.maximum(h, 0.0).astype(w2_ref.dtype)               # ReLU 1
    y = jnp.dot(h, w2_ref[...], preferred_element_type=jnp.float32)
    o_ref[...] = jnp.maximum(y, 0.0).astype(o_ref.dtype)       # ReLU 2


# --------------------------------------------------------------------------
# Weight preparation: transpose / pad / cast ONCE, not per call.
# --------------------------------------------------------------------------
def prepare_adapter_weights(w1, w2, *, compute_dtype=jnp.bfloat16):
    """w1: (hidden, c_in), w2: (c_in, hidden)  (PyTorch nn.Linear layout).

    Returns (w1t, w2t) with shapes (c_in, hidden_p) and (hidden_p, c_in_p),
    where hidden_p / c_in_p are rounded up to multiples of 128 so both the
    second matmul's K dim and the output lane dim are dense.  Zero padding is
    numerically exact here (padded hidden cols are ReLU(x @ 0) = 0 and padded
    output cols are x @ 0 = 0, sliced off by the wrapper).
    """
    hidden, c_in = w1.shape
    assert w2.shape == (c_in, hidden), "w2 must be (c_in, hidden)"
    hidden_p = _round_up(hidden, 128)          # lane/K-dense hidden dim
    c_in_p = _round_up(c_in, 128)              # lane-dense output dim
    w1t = jnp.transpose(w1).astype(compute_dtype)     # (c_in, hidden)
    w2t = jnp.transpose(w2).astype(compute_dtype)     # (hidden, c_in)
    if hidden_p != hidden:
        w1t = jnp.pad(w1t, ((0, 0), (0, hidden_p - hidden)))
        w2t = jnp.pad(w2t, ((0, hidden_p - hidden), (0, 0)))
    if c_in_p != c_in:
        w2t = jnp.pad(w2t, ((0, 0), (0, c_in_p - c_in)))
    return w1t, w2t


def _supports_single_buffered_weights():
    try:
        pl.BlockSpec((8, 128), lambda i: (0, 0), pipeline_mode=pl.Buffered(1))
        return True
    except (AttributeError, TypeError):        # older jax w/o pipeline_mode
        return False


def _make_weight_spec(shape, single_buffer):
    index_map = lambda i: (0, 0)               # constant block across the grid
    if single_buffer:
        return pl.BlockSpec(shape, index_map, pipeline_mode=pl.Buffered(1))
    return pl.BlockSpec(shape, index_map)


def _vmem_capacity_bytes(default=64 * 1024 * 1024):
    try:
        return int(pltpu.get_tpu_info().vmem_capacity_bytes)
    except Exception:
        return default


def _choose_tile_rows(rows, c_in, c_in_p, hidden_p, x_bytes, out_bytes,
                      weight_vmem_bytes, budget_bytes, max_tile_rows):
    avail = max(budget_bytes - weight_vmem_bytes, budget_bytes // 4)
    per_row = (2 * c_in * x_bytes            # double-buffered x tile
               + 2 * c_in_p * out_bytes      # double-buffered out tile
               + hidden_p * (4 + 2)          # h (fp32 + bf16) temporaries
               + c_in * 2                    # bf16 cast of the x tile
               + c_in_p * 4)                 # y fp32 before cast/store
    t = int(avail // max(per_row, 1))
    t = min(t, max_tile_rows, rows)
    if t >= 256:
        t = (t // 256) * 256                 # fully dense sublane/MXU rows
    elif t >= 8:
        t = (t // 8) * 8                     # keep the (8, 128) constraint
    elif rows >= 8:
        t = 8
    else:
        t = rows                             # tiny input: full-dim block legal
    return max(t, 1)


def _vmem_footprint(tile_rows, c_in, c_in_p, hidden_p, x_bytes, out_bytes,
                    weight_vmem_bytes):
    io = 2 * tile_rows * (c_in * x_bytes + c_in_p * out_bytes)
    scratch = tile_rows * (hidden_p * (4 + 2) + c_in * 2 + c_in_p * 4)
    return weight_vmem_bytes + io + scratch


# --------------------------------------------------------------------------
# Forward with pre-prepared (transposed / padded / bf16) weights.
# --------------------------------------------------------------------------
def adapter_forward_prepared(x, w1t, w2t, *, tile_rows=None, out_dtype=None,
                             vmem_budget_bytes=None, max_tile_rows=1024):
    c_in = x.shape[-1]
    hidden_p = w1t.shape[1]
    c_in_p = w2t.shape[1]
    assert w1t.shape == (c_in, hidden_p)
    assert w2t.shape == (hidden_p, c_in_p)
    assert c_in_p % 128 == 0, "prepared W2.T must be lane-dense (pad c_in)"

    lead_shape = x.shape[:-1]
    rows = 1
    for d in lead_shape:
        rows *= d
    x2d = x.reshape(rows, c_in)

    x_bytes = x.dtype.itemsize
    out_dtype = x.dtype if out_dtype is None else jnp.dtype(out_dtype)
    out_bytes = jnp.dtype(out_dtype).itemsize

    single_buffer = _supports_single_buffered_weights()
    w_bytes = (w1t.size + w2t.size) * w1t.dtype.itemsize
    weight_vmem = w_bytes if single_buffer else 2 * w_bytes

    # Generation-aware VMEM budget: ~112 MiB usable on v5e/v6e (128 MiB),
    # ~48 MiB on v7x (64 MiB).
    vmem_cap = _vmem_capacity_bytes()
    if vmem_budget_bytes is None:
        vmem_budget_bytes = max(vmem_cap - 16 * 1024 * 1024, vmem_cap // 2)

    if tile_rows is None:
        tile_rows = _choose_tile_rows(rows, c_in, c_in_p, hidden_p, x_bytes,
                                      out_bytes, weight_vmem,
                                      vmem_budget_bytes, max_tile_rows)
    tile_rows = min(int(tile_rows), rows)
    if tile_rows != rows and tile_rows % 8 != 0:
        tile_rows = max((tile_rows // 8) * 8, min(8, rows))

    # Guarantee >= 2 grid steps whenever possible so v7x's two TensorCores can
    # both stream HBM along the "parallel" row axis (512 vs 1024 row tiles are
    # within ~1% of roofline, so this costs nothing on single-TC chips).
    if rows >= 16:
        half = ((rows // 2) // 8) * 8
        if half >= 8:
            tile_rows = min(tile_rows, half)

    grid = (pl.cdiv(rows, tile_rows),)

    footprint = _vmem_footprint(tile_rows, c_in, c_in_p, hidden_p, x_bytes,
                                out_bytes, weight_vmem)
    vmem_limit = int(min(max(vmem_cap - 4 * 1024 * 1024, vmem_cap // 2),
                         footprint + 4 * 1024 * 1024))

    cost = pl.CostEstimate(
        flops=2 * rows * c_in * hidden_p + 2 * rows * hidden_p * c_in_p,
        transcendentals=0,
        bytes_accessed=rows * (c_in * x_bytes + c_in_p * out_bytes) + w_bytes)

    out2d = pl.pallas_call(
        _adapter_kernel,
        out_shape=jax.ShapeDtypeStruct((rows, c_in_p), out_dtype),
        grid_spec=pltpu.PrefetchScalarGridSpec(
            num_scalar_prefetch=0,
            grid=grid,
            in_specs=[
                pl.BlockSpec((tile_rows, c_in), lambda i: (i, 0)),      # x
                _make_weight_spec((c_in, hidden_p), single_buffer),     # W1.T
                _make_weight_spec((hidden_p, c_in_p), single_buffer),   # W2.T
            ],
            out_specs=pl.BlockSpec((tile_rows, c_in_p), lambda i: (i, 0)),
        ),
        compiler_params=pltpu.CompilerParams(
            dimension_semantics=("parallel",),
            vmem_limit_bytes=vmem_limit,
        ),
        cost_estimate=cost,
    )(x2d, w1t, w2t)

    if c_in_p != c_in:
        out2d = out2d[:, :c_in]        # drop the zero-padded output lanes
    return out2d.reshape(*lead_shape, c_in)


def adapter_forward(x, w1, w2, *, compute_dtype=jnp.bfloat16, tile_rows=None,
                    out_dtype=None):
    """Convenience wrapper taking PyTorch-layout weights.

    For repeated calls, call prepare_adapter_weights once and use
    adapter_forward_prepared to avoid a per-call transpose/pad/cast.
    """
    w1t, w2t = prepare_adapter_weights(w1, w2, compute_dtype=compute_dtype)
    return adapter_forward_prepared(x, w1t, w2t, tile_rows=tile_rows,
                                    out_dtype=out_dtype)


def _reference(x, w1, w2):
    h = jnp.maximum(x @ w1.T, 0.0)
    return jnp.maximum(h @ w2.T, 0.0)


if __name__ == "__main__":
    key = jax.random.PRNGKey(0)
    k_x, k_w1, k_w2 = jax.random.split(key, 3)

    batch = 2
    seq = 8
    c_in = 32
    reduction = 4
    hidden = c_in // reduction

    # Deterministic synthetic parameters (kaiming-uniform-ish scale).
    w1 = jax.random.uniform(k_w1, (hidden, c_in), jnp.float32,
                            minval=-1.0, maxval=1.0) * (1.0 / (c_in ** 0.5))
    w2 = jax.random.uniform(k_w2, (c_in, hidden), jnp.float32,
                            minval=-1.0, maxval=1.0) * (1.0 / (hidden ** 0.5))
    x = jax.random.normal(k_x, (batch, seq, c_in), jnp.float32)

    # Prepare weights once (hoisted transpose/pad/cast), then run the kernel.
    w1t, w2t = prepare_adapter_weights(w1, w2)
    out = adapter_forward_prepared(x, w1t, w2t)
    out = jax.block_until_ready(out)

    ref = _reference(x.reshape(-1, c_in), w1, w2).reshape(batch, seq, c_in)
    assert out.shape == (batch, seq, c_in)
    # bf16 MXU math with fp32 accumulation vs fp32 reference -> loose tolerance.
    assert jnp.allclose(out, ref, atol=5e-2, rtol=5e-2), "mismatch vs reference"

    print("KERNEL_OK")
</pallas_src>

<mosaic_0001>
module attributes {stable_mosaic.version = 11 : i64} {
  func.func @_adapter_kernel(%arg0: i32, %arg1: memref<8x32xf32, #tpu.memory_space<vmem>>, %arg2: memref<32x128xbf16, #tpu.memory_space<vmem>>, %arg3: memref<128x128xbf16, #tpu.memory_space<vmem>>, %arg4: memref<8x128xf32, #tpu.memory_space<vmem>>) attributes {dimension_semantics = [#tpu.dimension_semantics<parallel>], iteration_bounds = array<i64: 2>, scalar_prefetch = 0 : i64, scratch_operands = 0 : i64, tpu.core_type = #tpu.core_type<tc>, window_params = [{transform_indices = @transform_0, window_bounds = array<i64: 8, 32>}, {pipeline_mode = #tpu.pipeline_mode<synchronous>, transform_indices = @transform_1, window_bounds = array<i64: 32, 128>}, {pipeline_mode = #tpu.pipeline_mode<synchronous>, transform_indices = @transform_2, window_bounds = array<i64: 128, 128>}, {transform_indices = @transform_3, window_bounds = array<i64: 8, 128>}]} {
    %c0 = arith.constant 0 : index
    %c0_0 = arith.constant 0 : index
    %0 = vector.load %arg1[%c0, %c0_0] : memref<8x32xf32, #tpu.memory_space<vmem>>, vector<8x32xf32>
    %1 = arith.truncf %0 : vector<8x32xf32> to vector<8x32xbf16>
    %c0_1 = arith.constant 0 : index
    %c0_2 = arith.constant 0 : index
    %2 = vector.load %arg2[%c0_1, %c0_2] : memref<32x128xbf16, #tpu.memory_space<vmem>>, vector<32x128xbf16>
    %cst = arith.constant dense<0.000000e+00> : vector<8x128xf32>
    %3 = tpu.matmul %1, %2, %cst {dimension_numbers = #tpu.dot_dimension_numbers<[1], [0], [0], [1], [0, 0, 1, 1], [], []>} : vector<8x32xbf16>, vector<32x128xbf16>, vector<8x128xf32> -> vector<8x128xf32>
    %cst_3 = arith.constant 0.000000e+00 : f32
    %4 = vector.broadcast %cst_3 : f32 to vector<8x128xf32>
    %5 = arith.maximumf %3, %4 : vector<8x128xf32>
    %6 = arith.truncf %5 : vector<8x128xf32> to vector<8x128xbf16>
    %c0_4 = arith.constant 0 : index
    %c0_5 = arith.constant 0 : index
    %7 = vector.load %arg3[%c0_4, %c0_5] : memref<128x128xbf16, #tpu.memory_space<vmem>>, vector<128x128xbf16>
    %cst_6 = arith.constant dense<0.000000e+00> : vector<8x128xf32>
    %8 = tpu.matmul %6, %7, %cst_6 {dimension_numbers = #tpu.dot_dimension_numbers<[1], [0], [0], [1], [0, 0, 1, 1], [], []>} : vector<8x128xbf16>, vector<128x128xbf16>, vector<8x128xf32> -> vector<8x128xf32>
    %cst_7 = arith.constant 0.000000e+00 : f32
    %9 = vector.broadcast %cst_7 : f32 to vector<8x128xf32>
    %10 = arith.maximumf %8, %9 : vector<8x128xf32>
    %c0_8 = arith.constant 0 : index
    %c0_9 = arith.constant 0 : index
    %11 = vector.load %arg4[%c0_8, %c0_9] : memref<8x128xf32, #tpu.memory_space<vmem>>, vector<8x128xf32>
    tpu.vector_store %arg4[%c0_8, %c0_9], %10 {strides = array<i32>} : memref<8x128xf32, #tpu.memory_space<vmem>>, vector<8x128xf32>,
    return
  }
  func.func @transform_0(%arg0: i32) -> (i32, i32) {
    %c0_i32 = arith.constant 0 : i32
    %c0_i32_0 = arith.constant 0 : i32
    return %arg0, %c0_i32 : i32, i32
  }
  func.func @transform_1(%arg0: i32) -> (i32, i32) {
    %c0_i32 = arith.constant 0 : i32
    %c0_i32_0 = arith.constant 0 : i32
    %c0_i32_1 = arith.constant 0 : i32
    return %c0_i32, %c0_i32_0 : i32, i32
  }
  func.func @transform_2(%arg0: i32) -> (i32, i32) {
    %c0_i32 = arith.constant 0 : i32
    %c0_i32_0 = arith.constant 0 : i32
    %c0_i32_1 = arith.constant 0 : i32
    return %c0_i32, %c0_i32_0 : i32, i32
  }
  func.func @transform_3(%arg0: i32) -> (i32, i32) {
    %c0_i32 = arith.constant 0 : i32
    %c0_i32_0 = arith.constant 0 : i32
    return %arg0, %c0_i32 : i32, i32
  }
}

</mosaic_0001>

<bundles_post_ra>
// kernel: tpu_custom_call.1
= control target key start
LH: loop header
LB: loop body
LE: loop exit
PB: predicated region body
PF: predicated region fallthrough
CT: control target
= control target key end

     0   :  { %8 = vsyncpa [#allocation3], 0  ;;  %s1056_s0 = inlined_call_operand.hbm [shape: f32[16,32], index: 0, kind: input, shape index: {}]   ;;  %s1057_s1 = inlined_call_operand.hbm [shape: bf16[32,128], index: 1, kind: input, shape index: {}]   ;;  %s1058_s2 = inlined_call_operand.hbm [shape: bf16[128,128], index: 2, kind: input, shape index: {}]   ;;  %s1059_s3 = inlined_call_operand.hbm [shape: f32[16,128], index: 3, kind: output, shape index: {}]  }
   0x1   :  { %10 = vsyncpa [#allocation3 + $0x1], 0 }
   0x2   :  { %11 = vsyncpa [#allocation6], 0 }
   0x3   :  { %12 = vsyncpa [#allocation4], 0 }
   0x4   :  { %14 = vsyncpa [#allocation4 + $0x1], 0  ;;  %s823_s12 = smov 0   ;;  %s825_s13 = smov 0  }
   0x5   :  { %s827_s14 = smov 0   ;;  %s829_s15 = smov 0  }
   0x6 LB: > { %s844_s16 = sadd.s32 4294967295, %s793_s15   ;;  %s489_s17 = sadd.s32 4294967294, %s793_s15   ;;  %s793_s15 = sphi %s829_s15, %s1079_s15   ;;  %s789_s14 = sphi %s827_s14, %s1078_s14   ;;  %s785_s13 = sphi %s825_s13, %s1077_s13   ;;  %s781_s12 = sphi %s823_s12, %s1076_s12  }
   0x7   : > { %p40_p0 = scmp.ne.s32.totalorder %s785_s13, %s781_s12  ;;  %p1060_p1 = scmp.eq.s32.totalorder %s844_s16, 0 }
   0x8   : > { %p112_p3 = scmp.eq.s32.totalorder %s489_s17, 1  ;;  %p490_p5 = scmp.ge.s32.totalorder %s793_s15, 1 }
   0x9   : > { %p853_p4 = por %p1060_p1, %p40_p0  ;;  %p119_p7 = scmp.lt.s32.totalorder %s793_s15, 3 }
   0xa   : > { %p858_p6 = por %p112_p3, %p40_p0  ;;  %s795_s21 = smov [#allocation5]  }
   0xb   : > { %s1063_s18 = scalar_select %p853_p4, 1, 0 }
   0xc   : > { %s1064_s19 = scalar_select %p858_p6, 1, 0 }
   0xd   : > { %p863_p8 = pnand %p490_p5, %p119_p7  ;;  %s131_s22 = sshll.u32 %s795_s21, 4  ;;  %s867_s22 = int_to_ptr.vmem [resolvable:$true] %s131_s22 }
   0xe   : > { %s796_s24 = smov [#allocation7]   ;;  %s637_s28 = scalar_lea.hbm %s1057_s1, 256 }
   0xf   : > { %p568_p9 = pneg %p863_p8  ;;  %s144_s25 = sshll.u32 %s796_s24, 4  ;;  %s878_s25 = int_to_ptr.vmem [resolvable:$true] %s144_s25 }
  0x10   : > { %p638_p12 = scmp.ne.s32.totalorder %s1057_s1, %s637_s28  ;;  %p644_p5 = scmp.lt.u32.totalorder %s637_s28, %s1057_s1 }
  0x11   : > { %p874_p11 = pnand %p568_p9, %p1060_p1 }
  0x13   : > { %p639_p13 = pneg %p874_p11 }
  0x15   : > { %p640_p0 = pnand %p639_p13, %p638_p12 }
  0x17   : > { %p641_p3 = pneg %p640_p0 }
  0x19   : > { %p646_p7 = pnand %p644_p5, %p641_p3 }
  0x1b   : > { %649 = shalt.err (!%p646_p7)
}
  0x1c   : > { %s650_s6 = scalar_lea.vmem %s867_s22, 256  ;;  %p658_p2 = scmp.lt.s32.totalorder %s867_s22, %s867_s22 }
  0x1d   : > { %p651_p9 = scmp.ne.s32.totalorder %s867_s22, %s650_s6  ;;  %p659_p12 = scmp.lt.s32.totalorder %s650_s6, %s650_s6 }
  0x1f   : > { %p653_p10 = pnand %p651_p9, %p639_p13  ;;  %p660_p0 = por %p659_p12, %p658_p2 }
  0x21   : > { %p654_p1 = pneg %p653_p10 }
  0x23   : > { %p661_p6 = pnand %p660_p0, %p654_p1 }
  0x25   : > { %664 = shalt.err (!%p661_p6)
}
  0x26   : > { %s797_s7 = smov 64   ;;  %s798_s8 = smov 4  }
  0x27   : > { %571 = dma.hbm_to_vmem [thread:$0]  (!%p874_p11), %s1057_s1, 256, %s867_s22, [#allocation6], %s797_s7, %s797_s7, %s798_s8  }
  0x28   : > { %s665_s21 = scalar_lea.hbm %s1058_s2, 1024 }
  0x29   : > { %p666_p2 = scmp.ne.s32.totalorder %s1058_s2, %s665_s21  ;;  %p672_p10 = scmp.lt.u32.totalorder %s665_s21, %s1058_s2 }
  0x2b   : > { %p668_p1 = pnand %p666_p2, %p639_p13 }
  0x2d   : > { %p669_p6 = pneg %p668_p1 }
  0x2f   : > { %p674_p3 = pnand %p672_p10, %p669_p6 }
  0x31   : > { %677 = shalt.err (!%p674_p3)
}
  0x32   : > { %s678_s22 = scalar_lea.vmem %s878_s25, 1024  ;;  %p686_p12 = scmp.lt.s32.totalorder %s878_s25, %s878_s25 }
  0x33   : > { %p679_p5 = scmp.ne.s32.totalorder %s878_s25, %s678_s22  ;;  %p687_p0 = scmp.lt.s32.totalorder %s678_s22, %s678_s22 }
  0x35   : > { %p681_p7 = pnand %p679_p5, %p639_p13  ;;  %p688_p2 = por %p687_p0, %p686_p12 }
  0x37   : > { %p682_p9 = pneg %p681_p7 }
  0x39   : > { %p689_p1 = pnand %p688_p2, %p682_p9 }
  0x3b   : > { %692 = shalt.err (!%p689_p1)
}
  0x3c   : > { %574 = dma.hbm_to_vmem [thread:$0]  (!%p874_p11), %s1058_s2, 1024, %s878_s25, [#allocation6], %s797_s7, %s797_s7, %s798_s8  }
  0x3d   : > { %s933_s4 = sadd.s32 1, %s793_s15   ;;  %s27_s23 = sadd.s32 1, %s789_s14 }
  0x3e   : > { %s24_s5 = ssub.s32 %s793_s15, %s933_s4  ;;  %p34_p13 = scmp.ne.s32.totalorder %s789_s14, %s785_s13 }
  0x3f   : > { %p25_p6 = scmp.eq.s32.totalorder %s24_s5, 0  ;;  %p35_p10 = scmp.eq.s32.totalorder %s793_s15, 0 }
  0x40   : > { %p1067_p3 = scmp.eq.s32.totalorder %s844_s16, 1  ;;  %p585_p7 = scmp.lt.s32.totalorder %s793_s15, 2 }
  0x41   : > { %s949_s9 = scalar_select %p25_p6, %s789_s14, %s27_s23  }
  0x42   : > { %p943_p5 = por %p1067_p3, %p34_p13  ;;  %p36_p9 = por %p35_p10, %p34_p13 }
  0x43   : > { %s158_s10 = sand.u32 1, %s789_s14   ;;  %s495_s25 = sshll.u32 %s793_s15, 7 }
  0x44   : > { %s1068_s6 = scalar_select %p943_p5, 1, 0 }
  0x45   : > { %s494_s11 = sshll.u32 %s158_s10, 3  ;;  %s956_s17 = scalar_lea.hbm %s1056_s0, %s495_s25 }
  0x46   : > { %s162_s21 = scalar_lea.vmem [#allocation2], %s494_s11  ;;  %p960_p11 = pnand %p585_p7, %p36_p9 }
  0x47   : > { %s169_s24 = sshll.u32 %s162_s21, 4  ;;  %s159_s27 = scalar_lea.sflag [#allocation3], %s158_s10  ;;  %s958_s24 = int_to_ptr.vmem [resolvable:$true] %s169_s24 }
  0x48   : > { %s693_s28 = scalar_lea.hbm %s956_s17, 128  ;;  %p695_p0 = pneg %p960_p11 }
  0x49   : > { %p694_p12 = scmp.ne.s32.totalorder %s956_s17, %s693_s28  ;;  %s698_s30 = scalar_lea.hbm %s1056_s0, 256 }
  0x4a   : > { %p699_p13 = scmp.lt.u32.totalorder %s956_s17, %s1056_s0  ;;  %p700_p6 = scmp.lt.u32.totalorder %s698_s30, %s693_s28 }
  0x4b   : > { %p696_p2 = pnand %p695_p0, %p694_p12  ;;  %p702_p3 = scmp.lt.u32.totalorder %s693_s28, %s956_s17 }
  0x4c   : > { %p701_p10 = por %p700_p6, %p699_p13 }
  0x4d   : > { %p697_p1 = pneg %p696_p2 }
  0x4e   : > { %p703_p7 = por %p702_p3, %p701_p10 }
  0x50   : > { %p704_p9 = pnand %p703_p7, %p697_p1 }
  0x52   : > { %707 = shalt.err (!%p704_p9)
}
  0x53   : > { %s708_s10 = scalar_lea.vmem %s958_s24, 128  ;;  %s799_s11 = smov [#allocation2]  }
  0x54   : > { %p709_p12 = scmp.ne.s32.totalorder %s958_s24, %s708_s10  ;;  %s713_s25 = sshll.u32 %s799_s11, 4  ;;  %s714_s25 = int_to_ptr.vmem [resolvable:$false] %s713_s25 }
  0x55   : > { %s715_s7 = scalar_lea.vmem %s714_s25, 256  ;;  %p716_p4 = scmp.lt.s32.totalorder %s958_s24, %s714_s25 }
  0x56   : > { %p711_p2 = pnand %p709_p12, %p695_p0  ;;  %p717_p13 = scmp.lt.s32.totalorder %s715_s7, %s708_s10 }
  0x58   : > { %p712_p5 = pneg %p711_p2  ;;  %p718_p6 = por %p717_p13, %p716_p4 }
  0x5a   : > { %p719_p10 = pnand %p718_p6, %p712_p5 }
  0x5c   : > { %722 = shalt.err (!%p719_p10)
}
  0x5d   : > { %578 = dma.hbm_to_vmem [thread:$0]  (!%p960_p11), %s956_s17, 128, %s958_s24, %s159_s27  }
  0x5e   : > { %178 = sbr.rel (%p863_p8) target bundleno = 559 (0x22f), region = 32  ;;  %s992_s8 = sand.u32 (!%p863_p8), 1, %s785_s13  }
  0x5f   : > { %s497_s21 = sshll.u32 (!%p863_p8), %s992_s8, 3  ;;  %s181_s28 = scalar_lea.sflag (!%p863_p8), [#allocation3], %s992_s8 }
  0x60   : > { %s184_s22 = scalar_lea.vmem (!%p863_p8), [#allocation2], %s497_s21  ;;  %p1070_p4 = scmp.ne.s32.totalorder (!%p863_p8), %s1063_s18, 0 }
  0x65   : > { %768 = dma.done.wait (%p1070_p4), %s181_s28, 128  }
  0x66   : > { %770 = vsyncadd (%p1070_p4), %s181_s28, 4294967168  ;;  %p1071_p5 = scmp.eq.s32.totalorder %s844_s16, 0 }
  0x68   : > { %772 = dma.done.wait (%p1071_p5), [#allocation6], 1280   ;;  %p1072_p8 = pmov %p1071_p5 }
  0x69   : > { %v800_v0 = vmov 0.0   ;;  %vm801_vm0 = vmmov 0   ;;  %v627_v1 = vld [vmem:[#allocation5] sm:$0xff]   ;;  %v628_v2 = vld [vmem:[#allocation5 + $0x8] sm:$0xff]   ;;  %v216_v3 = vld [vmem:[%s184_s22] sm:$0xff]  ;;  %vm234_vm1 = vcmask 261120  }
  0x6a   : > { %774 = vsyncadd (%p1072_p8), [#allocation6], 4294966016  ;;  %528 = vmatprep.subr.bf16.mxu0 %v800_v0  ;;  %532 = vmatprep.mubr.msk.bf16.mxu0 %vm801_vm0, %v800_v0  ;;  %v629_v4 = vld [vmem:[#allocation7] sm:$0xff]   ;;  %v217_v5 = vpack.c.bf16 %v216_v3, %v216_v3  ;;  %v630_v6 = vld [vmem:[#allocation7 + $0x8] sm:$0xff]   ;;  %s513_s18 = sshll.u32 %s844_s16, 7  ;;  %s214_s20 = scalar_lea.vmem [#allocation8], %s497_s21 }
  0x6b   : > { %536 = vmatprep.subr.bf16.mxu1 %v800_v0  ;;  %552 = vmatprep.mubr.msk.bf16.mxu1 %vm801_vm0, %v800_v0  ;;  %v631_v7 = vld [vmem:[#allocation7 + $0x10] sm:$0xff]   ;;  %v632_v8 = vld [vmem:[#allocation7 + $0x18] sm:$0xff]   ;;  %v633_v9 = vld [vmem:[#allocation7 + $0x20] sm:$0xff]   ;;  %s400_s17 = sshll.u32 %s214_s20, 4  ;;  %s1012_s27 = scalar_lea.hbm %s1059_s3, %s513_s18  ;;  %s1014_s17 = int_to_ptr.vmem [resolvable:$true] %s400_s17 }
  0x6c   : > { %529 = vmatpush3.bf16.msra.mxu0 %v627_v1  ;;  %537 = vmatpush3.bf16.msra.mxu1 %v629_v4  ;;  %v634_v10 = vld [vmem:[#allocation7 + $0x28] sm:$0xff]   ;;  %v635_v11 = vld [vmem:[#allocation7 + $0x30] sm:$0xff]   ;;  %v636_v12 = vld [vmem:[#allocation7 + $0x38] sm:$0xff]   ;;  %s387_s16 = scalar_lea.sflag [#allocation4], %s992_s8  ;;  %s723_s29 = scalar_lea.vmem %s1014_s17, 128 }
  0x6d   : > { %530 = vmatprep.subr.bf16.mxu0 %v800_v0  ;;  %538 = vmatprep.subr.bf16.mxu1 %v800_v0  ;;  %p724_p11 = scmp.ne.s32.totalorder %s1014_s17, %s723_s29  ;;  %p1073_p0 = scmp.ne.s32.totalorder %s1068_s6, 0 }
  0x6e   : > { %s802_s30 = smov [#allocation8]  }
  0x6f   : > { %p725_p1 = pnand %p724_p11, %p1073_p0  ;;  %s727_s23 = sshll.u32 %s802_s30, 4  ;;  %s728_s23 = int_to_ptr.vmem [resolvable:$false] %s727_s23 }
  0x70   : > { %531 = vmatpush3.bf16.msra.mxu0 %v628_v2  ;;  %539 = vmatpush3.bf16.msra.mxu1 %v630_v6  ;;  %s729_s5 = scalar_lea.vmem %s728_s23, 256  ;;  %p730_p7 = scmp.lt.s32.totalorder %s1014_s17, %s728_s23 }
  0x71   : > { %540 = vmatprep.subr.bf16.mxu1 %v800_v0  ;;  %p726_p3 = pneg %p725_p1  ;;  %p731_p9 = scmp.lt.s32.totalorder %s729_s5, %s723_s29 }
  0x73   : > { %533 = vmatmul.mubr.msk.bf16.vlgmr.msra.gmra.mrb[0].mxu0 %vm234_vm1, %v217_v5  ;;  %p732_p12 = por %p731_p9, %p730_p7 }
  0x74   : > { %541 = vmatpush3.bf16.msra.mxu1 %v631_v7 }
  0x75   : > { %542 = vmatprep.subr.bf16.mxu1 %v800_v0  ;;  %p733_p2 = pnand %p732_p12, %p726_p3 }
  0x78   : > { %543 = vmatpush3.bf16.msra.mxu1 %v632_v8 }
  0x79   : > { %544 = vmatprep.subr.bf16.mxu1 %v800_v0 }
  0x7c   : > { %545 = vmatpush3.bf16.msra.mxu1 %v633_v9 }
  0x7d   : > { %546 = vmatprep.subr.bf16.mxu1 %v800_v0 }
  0x80   : > { %547 = vmatpush3.bf16.msra.mxu1 %v634_v10 }
  0x81   : > { %548 = vmatprep.subr.bf16.mxu1 %v800_v0 }
  0x84   : > { %549 = vmatpush3.bf16.msra.mxu1 %v635_v11 }
  0x85   : > { %550 = vmatprep.subr.bf16.mxu1 %v800_v0 }
  0x88   : > { %551 = vmatpush3.bf16.msra.mxu1 %v636_v12 }
 0x146   : > { %v272_v13 = vpop.f32.mrb[0].mxu0 }
 0x147   : > { %v278_v14 = vmax.f32 %v272_v13, 0.0  ;;  %v534_v15 = vpop.f32.mrb[1].mxu0 }
 0x148   : > { %v275_v16 = vpop.f32.mrb[2].mxu0 }
 0x149   : > { %v279_v17 = vpack.c.bf16 %v278_v14, %v278_v14  ;;  %v535_v18 = vpop.f32.mrb[3].mxu0 }
 0x14b   : > { %553 = vmatmul.mubr.bf16.vlgmr.msra.gmra.mrb[0].mxu1 %v279_v17 }
 0x21e   : > { %v378_v19 = vpop.f32.mrb[0].mxu1 }
 0x21f   : > { %v384_v20 = vmax.f32 %v378_v19, 0.0  ;;  %v554_v21 = vpop.f32.mrb[1].mxu1 }
 0x220   : > { %v381_v22 = vpop.f32.mrb[2].mxu1 }
 0x221   : > { %385 = vst [vmem:[%s214_s20] sm:$0xff] %v384_v20  ;;  %v555_v23 = vpop.f32.mrb[3].mxu1 }
 0x222   : > { %736 = shalt.err (!%p733_p2)
}
 0x223   : > { %s737_s10 = scalar_lea.hbm %s1012_s27, 128  ;;  %s741_s7 = scalar_lea.hbm %s1059_s3, 256 }
 0x224   : > { %p738_p13 = scmp.ne.s32.totalorder %s1012_s27, %s737_s10  ;;  %p742_p4 = scmp.lt.u32.totalorder %s1012_s27, %s1059_s3 }
 0x225   : > { %p743_p5 = scmp.lt.u32.totalorder %s741_s7, %s737_s10  ;;  %p745_p11 = scmp.lt.u32.totalorder %s737_s10, %s1012_s27 }
 0x226   : > { %p739_p6 = pnand %p738_p13, %p1073_p0 }
 0x227   : > { %p744_p8 = por %p743_p5, %p742_p4 }
 0x228   : > { %p740_p10 = pneg %p739_p6 }
 0x229   : > { %p746_p1 = por %p745_p11, %p744_p8 }
 0x22b   : > { %p747_p3 = pnand %p746_p1, %p740_p10 }
 0x22d   : > { %750 = shalt.err (!%p747_p3)
}
 0x22e   : > { %566 = dma.vmem_to_hbm [thread:$0]  (%p1073_p0), %s1014_s17, 128, %s1012_s27, %s387_s16  }
 0x22f PF: > { %s412_s28 = sand.u32 1, %s781_s12   ;;  %p1074_p7 = scmp.ne.s32.totalorder %s1064_s19, 0 }
 0x230   : > { %p1075_p9 = scmp.ge.s32.totalorder %s793_s15, 2  ;;  %s413_s22 = scalar_lea.sflag [#allocation4], %s412_s28 }
 0x232   : > { %p580_p12 = pnand %p1075_p9, %p1074_p7 }
 0x234   : > { %776 = dma.done.wait (!%p580_p12), %s413_s22, 128  }
 0x235   : > { %778 = vsyncadd (!%p580_p12), %s413_s22, 4294967168  ;;  %p17_p2 = scmp.ge.s32.totalorder %s933_s4, 4   ;;  %s1076_s12 = smov %s785_s13 }
 0x236   : > { %s1077_s13 = smov %s789_s14  ;;  %s1078_s14 = smov %s949_s9 }
 0x237   : > { %s1079_s15 = smov %s933_s4  ;;  %19 = sbr.rel (!%p17_p2) target bundleno = 6 (0x6), region = 85 }
 0x23e   :  { %418 = vsyncpa [#allocation3], 1 }
 0x23f   :  { %420 = vsyncpa [#allocation3 + $0x1], 1 }
 0x240   :  { %421 = vsyncpa [#allocation6], 1 }
 0x241   :  { %422 = vsyncpa [#allocation4], 1 }
 0x242   :  { %424 = vsyncpa [#allocation4 + $0x1], 1 }

</bundles_post_ra>
